<compile_context>
chip_gen: v7x
topology: tpu7x:2x2x1
jax: 0.10.0
libtpu: 0.0.40
codegen_flags: <defaults>
</compile_context>

<pallas_src>
import jax
import jax.numpy as jnp
from jax.experimental import pallas as pl
from jax.experimental.pallas import tpu as pltpu


def _round_up(x: int, m: int) -> int:
    return ((x + m - 1) // m) * m


def _siamese_kernel(x1_ref, x2_ref, wa_ref, wb_ref, be_ref, w1_ref, b1_ref,
                    w2_ref, o_ref, acc_ref):
    k = pl.program_id(0)

    @pl.when(k == 0)
    def _init():
        acc_ref[...] = jnp.zeros_like(acc_ref)

    # Extractor GEMM (flatten -> Linear), K-tiled, bf16 on the MXU, f32 accumulate.
    # concat([x1, x2], dim=2) is folded into the pre-split weight row blocks.
    acc_ref[...] += (
        jnp.dot(x1_ref[...], wa_ref[...], preferred_element_type=jnp.float32)
        + jnp.dot(x2_ref[...], wb_ref[...], preferred_element_type=jnp.float32))

    @pl.when(k == pl.num_programs(0) - 1)
    def _finalize():
        feats = acc_ref[...] + be_ref[...]                      # f32 bias add
        # Head layer 0: Linear + Sigmoid (Dropout = identity in eval).
        h = jnp.dot(feats.astype(jnp.bfloat16), w1_ref[...],
                    preferred_element_type=jnp.float32) + b1_ref[...]
        h = jax.nn.sigmoid(h)                                   # f32 on EUP
        # Head final: Linear(H1 -> 1, bias=False) as VPU mul + cross-lane reduce
        # (avoids an N=1 MXU matmul / masked output column).
        o_ref[...] = jnp.sum(h * w2_ref[...], axis=-1, keepdims=True)


def concat_siamese_forward(x1, x2, params, *, tk=512):
    """ConcatSiamese forward.  x1, x2: (B, C, H, W) float32.  Returns (B,) float32."""
    we, be, w1, b1, w2 = params
    B, C, H, W = x1.shape
    F = we.shape[1]
    H1 = w1.shape[1]
    D1 = C * H * W                       # flattened features per input
    assert we.shape[0] == 2 * D1

    # One-time weight re-layout: rows of `we` hit by x1 vs x2 after the
    # concat([x1, x2], dim=2) + flatten of the PyTorch forward.
    we_r = we.reshape(C, 2 * H, W, F)
    we_a = we_r[:, :H].reshape(D1, F)    # rows multiplying x1 features
    we_b = we_r[:, H:].reshape(D1, F)    # rows multiplying x2 features

    # Lane-dense padding of F / H1 (multiples of 128) and K padding to a tile.
    LANE = 128
    Fp = _round_up(F, LANE)
    H1p = _round_up(H1, LANE)
    tk = min(tk, _round_up(D1, LANE))
    Dp = _round_up(D1, tk)
    grid_k = Dp // tk

    def pad2(a, rows, cols):
        return jnp.pad(a, ((0, rows - a.shape[0]), (0, cols - a.shape[1])))

    x1f = pad2(x1.reshape(B, D1), B, Dp).astype(jnp.bfloat16)
    x2f = pad2(x2.reshape(B, D1), B, Dp).astype(jnp.bfloat16)
    wa = pad2(we_a, Dp, Fp).astype(jnp.bfloat16)
    wb = pad2(we_b, Dp, Fp).astype(jnp.bfloat16)
    bep = pad2(be.reshape(1, F), 1, Fp).astype(jnp.float32)
    w1p = pad2(w1, Fp, H1p).astype(jnp.bfloat16)
    b1p = pad2(b1.reshape(1, H1), 1, H1p).astype(jnp.float32)
    w2p = pad2(w2.reshape(1, H1), 1, H1p).astype(jnp.float32)   # final weight as a row

    const = lambda shape: pl.BlockSpec(shape, lambda k: (0, 0))

    cost = pl.CostEstimate(
        flops=2 * B * (2 * Dp) * Fp + 2 * B * Fp * H1p,
        transcendentals=B * H1p,
        bytes_accessed=(2 * Dp * Fp + 2 * B * Dp + Fp * H1p) * 2
                       + (Fp + 2 * H1p + B) * 4,
    )

    out = pl.pallas_call(
        _siamese_kernel,
        out_shape=jax.ShapeDtypeStruct((B, 1), jnp.float32),
        grid=(grid_k,),
        in_specs=[
            pl.BlockSpec((B, tk), lambda k: (0, k)),    # x1 feature chunk
            pl.BlockSpec((B, tk), lambda k: (0, k)),    # x2 feature chunk
            pl.BlockSpec((tk, Fp), lambda k: (k, 0)),   # extractor weight rows for x1
            pl.BlockSpec((tk, Fp), lambda k: (k, 0)),   # extractor weight rows for x2
            const((1, Fp)),      # extractor bias
            const((Fp, H1p)),    # head linear-0 weight
            const((1, H1p)),     # head linear-0 bias
            const((1, H1p)),     # head final weight (no bias), as a row
        ],
        out_specs=const((B, 1)),
        scratch_shapes=[pltpu.VMEM((B, Fp), jnp.float32)],       # feats accumulator
        compiler_params=pltpu.CompilerParams(
            dimension_semantics=("arbitrary",),                  # reduction axis
            vmem_limit_bytes=32 * 1024 * 1024,                   # safe on v7x too
        ),
        cost_estimate=cost,
    )(x1f, x2f, wa, wb, bep, w1p, b1p, w2p)

    # x.view(len(x))
    return out.reshape(B)


def init_params(key, d_in, feat_dim, mlp_hidden_dims):
    """Deterministic synthetic parameters (extractor Linear + MLP head)."""
    assert len(mlp_hidden_dims) == 1, "demo uses a single hidden dim"
    h1 = mlp_hidden_dims[0]
    k0, k1, k2, k3, k4 = jax.random.split(key, 5)
    we = jax.random.normal(k0, (d_in, feat_dim), jnp.float32) * 0.02
    be = jax.random.normal(k1, (feat_dim,), jnp.float32) * 0.02
    w1 = jax.random.normal(k2, (feat_dim, h1), jnp.float32) * 0.1
    b1 = jax.random.normal(k3, (h1,), jnp.float32) * 0.1
    w2 = jax.random.normal(k4, (h1, 1), jnp.float32) * 0.1      # bias=False
    return we, be, w1, b1, w2


if __name__ == "__main__":
    key = jax.random.PRNGKey(0)
    kx1, kx2, kp = jax.random.split(key, 3)

    B, C, H, W = 2, 4, 16, 16
    feat_dim = 32
    mlp_hidden_dims = [16]

    x1 = jax.random.normal(kx1, (B, C, H, W), jnp.float32)
    x2 = jax.random.normal(kx2, (B, C, H, W), jnp.float32)

    d_in = C * (2 * H) * W
    params = init_params(kp, d_in, feat_dim, mlp_hidden_dims)

    fwd = jax.jit(concat_siamese_forward)
    out = jax.block_until_ready(fwd(x1, x2, params))
    assert out.shape == (B,)

    we, be, w1, b1, w2 = params

    # Strict reference: same numerics as the kernel (bf16 MXU inputs, f32 accum).
    D1 = C * H * W
    we_r = we.reshape(C, 2 * H, W, feat_dim)
    we_a = we_r[:, :H].reshape(D1, feat_dim)
    we_b = we_r[:, H:].reshape(D1, feat_dim)
    x1f = x1.reshape(B, D1).astype(jnp.bfloat16)
    x2f = x2.reshape(B, D1).astype(jnp.bfloat16)
    feats = (jnp.dot(x1f, we_a.astype(jnp.bfloat16), preferred_element_type=jnp.float32)
             + jnp.dot(x2f, we_b.astype(jnp.bfloat16), preferred_element_type=jnp.float32)
             + be[None, :])
    h = jax.nn.sigmoid(
        jnp.dot(feats.astype(jnp.bfloat16), w1.astype(jnp.bfloat16),
                preferred_element_type=jnp.float32) + b1[None, :])
    ref_bf16 = jnp.sum(h * w2.reshape(1, -1), axis=-1)
    assert jnp.allclose(out, ref_bf16, atol=1e-3, rtol=1e-3), (out, ref_bf16)

    # Semantic reference: faithful f32 PyTorch path (concat -> extractor -> head).
    xf = jnp.concatenate([x1, x2], axis=2).reshape(B, -1)
    feats32 = xf @ we + be[None, :]
    ref_f32 = (jax.nn.sigmoid(feats32 @ w1 + b1[None, :]) @ w2).reshape(B)
    assert jnp.allclose(out, ref_f32, atol=2e-2, rtol=2e-2), (out, ref_f32)

    print("KERNEL_OK")
</pallas_src>

<mosaic_0001>
module attributes {stable_mosaic.version = 11 : i64} {
  func.func @_siamese_kernel(%arg0: i32, %arg1: memref<2x512xbf16, #tpu.memory_space<vmem>>, %arg2: memref<2x512xbf16, #tpu.memory_space<vmem>>, %arg3: memref<512x128xbf16, #tpu.memory_space<vmem>>, %arg4: memref<512x128xbf16, #tpu.memory_space<vmem>>, %arg5: memref<1x128xf32, #tpu.memory_space<vmem>>, %arg6: memref<128x128xbf16, #tpu.memory_space<vmem>>, %arg7: memref<1x128xf32, #tpu.memory_space<vmem>>, %arg8: memref<1x128xf32, #tpu.memory_space<vmem>>, %arg9: memref<2x1xf32, #tpu.memory_space<vmem>>, %arg10: memref<2x128xf32, #tpu.memory_space<vmem>>) attributes {dimension_semantics = [#tpu.dimension_semantics<arbitrary>], iteration_bounds = array<i64: 2>, scalar_prefetch = 0 : i64, scratch_operands = 1 : i64, tpu.core_type = #tpu.core_type<tc>, window_params = [{transform_indices = @transform_0, window_bounds = array<i64: 2, 512>}, {transform_indices = @transform_1, window_bounds = array<i64: 2, 512>}, {transform_indices = @transform_2, window_bounds = array<i64: 512, 128>}, {transform_indices = @transform_3, window_bounds = array<i64: 512, 128>}, {pipeline_mode = #tpu.pipeline_mode<synchronous>, transform_indices = @transform_4, window_bounds = array<i64: 1, 128>}, {pipeline_mode = #tpu.pipeline_mode<synchronous>, transform_indices = @transform_5, window_bounds = array<i64: 128, 128>}, {pipeline_mode = #tpu.pipeline_mode<synchronous>, transform_indices = @transform_6, window_bounds = array<i64: 1, 128>}, {pipeline_mode = #tpu.pipeline_mode<synchronous>, transform_indices = @transform_7, window_bounds = array<i64: 1, 128>}, {pipeline_mode = #tpu.pipeline_mode<synchronous>, transform_indices = @transform_8, window_bounds = array<i64: 2, 1>}]} {
    %c0_i32 = arith.constant 0 : i32
    %0 = arith.cmpi eq, %arg0, %c0_i32 : i32
    %1 = arith.extui %0 : i1 to i32
    %c0_i32_0 = arith.constant 0 : i32
    %2 = arith.cmpi ne, %1, %c0_i32_0 : i32
    scf.if %2 {
      %cst_14 = arith.constant 0.000000e+00 : f32
      %16 = vector.broadcast %cst_14 : f32 to vector<2x128xf32>
      %c0_15 = arith.constant 0 : index
      %c0_16 = arith.constant 0 : index
      %17 = vector.load %arg10[%c0_15, %c0_16] : memref<2x128xf32, #tpu.memory_space<vmem>>, vector<2x128xf32>
      tpu.vector_store %arg10[%c0_15, %c0_16], %16 {strides = array<i32>} : memref<2x128xf32, #tpu.memory_space<vmem>>, vector<2x128xf32>,
    } else {
    }
    %c0 = arith.constant 0 : index
    %c0_1 = arith.constant 0 : index
    %3 = vector.load %arg10[%c0, %c0_1] : memref<2x128xf32, #tpu.memory_space<vmem>>, vector<2x128xf32>
    %c0_2 = arith.constant 0 : index
    %c0_3 = arith.constant 0 : index
    %4 = vector.load %arg1[%c0_2, %c0_3] : memref<2x512xbf16, #tpu.memory_space<vmem>>, vector<2x512xbf16>
    %c0_4 = arith.constant 0 : index
    %c0_5 = arith.constant 0 : index
    %5 = vector.load %arg3[%c0_4, %c0_5] : memref<512x128xbf16, #tpu.memory_space<vmem>>, vector<512x128xbf16>
    %cst = arith.constant dense<0.000000e+00> : vector<2x128xf32>
    %6 = tpu.matmul %4, %5, %cst {dimension_numbers = #tpu.dot_dimension_numbers<[1], [0], [0], [1], [0, 0, 1, 1], [], []>} : vector<2x512xbf16>, vector<512x128xbf16>, vector<2x128xf32> -> vector<2x128xf32>
    %c0_6 = arith.constant 0 : index
    %c0_7 = arith.constant 0 : index
    %7 = vector.load %arg2[%c0_6, %c0_7] : memref<2x512xbf16, #tpu.memory_space<vmem>>, vector<2x512xbf16>
    %c0_8 = arith.constant 0 : index
    %c0_9 = arith.constant 0 : index
    %8 = vector.load %arg4[%c0_8, %c0_9] : memref<512x128xbf16, #tpu.memory_space<vmem>>, vector<512x128xbf16>
    %cst_10 = arith.constant dense<0.000000e+00> : vector<2x128xf32>
    %9 = tpu.matmul %7, %8, %cst_10 {dimension_numbers = #tpu.dot_dimension_numbers<[1], [0], [0], [1], [0, 0, 1, 1], [], []>} : vector<2x512xbf16>, vector<512x128xbf16>, vector<2x128xf32> -> vector<2x128xf32>
    %10 = arith.addf %6, %9 : vector<2x128xf32>
    %11 = arith.addf %3, %10 : vector<2x128xf32>
    %c0_11 = arith.constant 0 : index
    %c0_12 = arith.constant 0 : index
    %12 = vector.load %arg10[%c0_11, %c0_12] : memref<2x128xf32, #tpu.memory_space<vmem>>, vector<2x128xf32>
    tpu.vector_store %arg10[%c0_11, %c0_12], %11 {strides = array<i32>} : memref<2x128xf32, #tpu.memory_space<vmem>>, vector<2x128xf32>,
    %c1_i32 = arith.constant 1 : i32
    %13 = arith.cmpi eq, %arg0, %c1_i32 : i32
    %14 = arith.extui %13 : i1 to i32
    %c0_i32_13 = arith.constant 0 : i32
    %15 = arith.cmpi ne, %14, %c0_i32_13 : i32
    scf.if %15 {
      %c0_14 = arith.constant 0 : index
      %c0_15 = arith.constant 0 : index
      %16 = vector.load %arg10[%c0_14, %c0_15] : memref<2x128xf32, #tpu.memory_space<vmem>>, vector<2x128xf32>
      %c0_16 = arith.constant 0 : index
      %c0_17 = arith.constant 0 : index
      %17 = vector.load %arg5[%c0_16, %c0_17] : memref<1x128xf32, #tpu.memory_space<vmem>>, vector<1x128xf32>
      %18 = vector.broadcast %17 : vector<1x128xf32> to vector<2x128xf32>
      %19 = arith.addf %16, %18 : vector<2x128xf32>
      %20 = arith.truncf %19 : vector<2x128xf32> to vector<2x128xbf16>
      %c0_18 = arith.constant 0 : index
      %c0_19 = arith.constant 0 : index
      %21 = vector.load %arg6[%c0_18, %c0_19] : memref<128x128xbf16, #tpu.memory_space<vmem>>, vector<128x128xbf16>
      %cst_20 = arith.constant dense<0.000000e+00> : vector<2x128xf32>
      %22 = tpu.matmul %20, %21, %cst_20 {dimension_numbers = #tpu.dot_dimension_numbers<[1], [0], [0], [1], [0, 0, 1, 1], [], []>} : vector<2x128xbf16>, vector<128x128xbf16>, vector<2x128xf32> -> vector<2x128xf32>
      %c0_21 = arith.constant 0 : index
      %c0_22 = arith.constant 0 : index
      %23 = vector.load %arg7[%c0_21, %c0_22] : memref<1x128xf32, #tpu.memory_space<vmem>>, vector<1x128xf32>
      %24 = vector.broadcast %23 : vector<1x128xf32> to vector<2x128xf32>
      %25 = arith.addf %22, %24 : vector<2x128xf32>
      %26 = arith.negf %25 : vector<2x128xf32>
      %27 = math.exp %26 : vector<2x128xf32>
      %cst_23 = arith.constant 1.000000e+00 : f32
      %28 = vector.broadcast %cst_23 : f32 to vector<2x128xf32>
      %29 = arith.addf %28, %27 : vector<2x128xf32>
      %30 = arith.divf %28, %29 : vector<2x128xf32>
      %c0_24 = arith.constant 0 : index
      %c0_25 = arith.constant 0 : index
      %31 = vector.load %arg8[%c0_24, %c0_25] : memref<1x128xf32, #tpu.memory_space<vmem>>, vector<1x128xf32>
      %32 = vector.broadcast %31 : vector<1x128xf32> to vector<2x128xf32>
      %33 = arith.mulf %30, %32 : vector<2x128xf32>
      %cst_26 = arith.constant dense<0.000000e+00> : vector<2xf32>
      %34 = vector.multi_reduction <add>, %33, %cst_26 [1] : vector<2x128xf32> to vector<2xf32>
      %35 = vector.shape_cast %34 : vector<2xf32> to vector<2x1xf32>
      %c0_27 = arith.constant 0 : index
      %c0_28 = arith.constant 0 : index
      %36 = vector.load %arg9[%c0_27, %c0_28] : memref<2x1xf32, #tpu.memory_space<vmem>>, vector<2x1xf32>
      tpu.vector_store %arg9[%c0_27, %c0_28], %35 {strides = array<i32>} : memref<2x1xf32, #tpu.memory_space<vmem>>, vector<2x1xf32>,
    } else {
    }
    return
  }
  func.func @transform_0(%arg0: i32) -> (i32, i32) {
    %c0_i32 = arith.constant 0 : i32
    %c0_i32_0 = arith.constant 0 : i32
    return %c0_i32, %arg0 : i32, i32
  }
  func.func @transform_1(%arg0: i32) -> (i32, i32) {
    %c0_i32 = arith.constant 0 : i32
    %c0_i32_0 = arith.constant 0 : i32
    return %c0_i32, %arg0 : i32, i32
  }
  func.func @transform_2(%arg0: i32) -> (i32, i32) {
    %c0_i32 = arith.constant 0 : i32
    %c0_i32_0 = arith.constant 0 : i32
    return %arg0, %c0_i32 : i32, i32
  }
  func.func @transform_3(%arg0: i32) -> (i32, i32) {
    %c0_i32 = arith.constant 0 : i32
    %c0_i32_0 = arith.constant 0 : i32
    return %arg0, %c0_i32 : i32, i32
  }
  func.func @transform_4(%arg0: i32) -> (i32, i32) {
    %c0_i32 = arith.constant 0 : i32
    %c0_i32_0 = arith.constant 0 : i32
    %c0_i32_1 = arith.constant 0 : i32
    return %c0_i32, %c0_i32_0 : i32, i32
  }
  func.func @transform_5(%arg0: i32) -> (i32, i32) {
    %c0_i32 = arith.constant 0 : i32
    %c0_i32_0 = arith.constant 0 : i32
    %c0_i32_1 = arith.constant 0 : i32
    return %c0_i32, %c0_i32_0 : i32, i32
  }
  func.func @transform_6(%arg0: i32) -> (i32, i32) {
    %c0_i32 = arith.constant 0 : i32
    %c0_i32_0 = arith.constant 0 : i32
    %c0_i32_1 = arith.constant 0 : i32
    return %c0_i32, %c0_i32_0 : i32, i32
  }
  func.func @transform_7(%arg0: i32) -> (i32, i32) {
    %c0_i32 = arith.constant 0 : i32
    %c0_i32_0 = arith.constant 0 : i32
    %c0_i32_1 = arith.constant 0 : i32
    return %c0_i32, %c0_i32_0 : i32, i32
  }
  func.func @transform_8(%arg0: i32) -> (i32, i32) {
    %c0_i32 = arith.constant 0 : i32
    %c0_i32_0 = arith.constant 0 : i32
    %c0_i32_1 = arith.constant 0 : i32
    return %c0_i32, %c0_i32_0 : i32, i32
  }
}

</mosaic_0001>

<bundles_post_ra>
// kernel: concat_siamese_forward.1
= control target key start
LH: loop header
LB: loop body
LE: loop exit
PB: predicated region body
PF: predicated region fallthrough
CT: control target
= control target key end

     0   :  { %s1651_s27 = smov 0   ;;  %s1804_s0 = inlined_call_operand.vmem [shape: bf16[2,1024], index: 0, kind: input, shape index: {}]   ;;  %s1805_s1 = inlined_call_operand.vmem [shape: bf16[2,1024], index: 1, kind: input, shape index: {}]   ;;  %s1806_s2 = inlined_call_operand.vmem [shape: bf16[1024,128], index: 2, kind: input, shape index: {}]   ;;  %s1807_s3 = inlined_call_operand.vmem [shape: bf16[1024,128], index: 3, kind: input, shape index: {}]   ;;  %s1808_s4 = inlined_call_operand.vmem [shape: f32[1,128], index: 4, kind: input, shape index: {}]   ;;  %s1809_s5 = inlined_call_operand.vmem [shape: bf16[128,128], index: 5, kind: input, shape index: {}]   ;;  %s1810_s6 = inlined_call_operand.vmem [shape: f32[1,128], index: 6, kind: input, shape index: {}]   ;;  %s1811_s7 = inlined_call_operand.vmem [shape: f32[1,128], index: 7, kind: input, shape index: {}]   ;;  %s1812_s8 = inlined_call_operand.vmem [shape: f32[2,1], index: 8, kind: output, shape index: {}]  }
   0x1 LB: > { %s1657_s28 = sadd.s32 4294967295, %s1600_s27   ;;  %p1300_p0 = scmp.ge.s32.totalorder %s1600_s27, 1  ;;  %s1600_s27 = sphi %s1651_s27, %s18_s27  }
   0x2   : > { %p289_p1 = scmp.lt.s32.totalorder %s1600_s27, 3 }
   0x4   : > { %p290_p2 = pnand %p1300_p0, %p289_p1 }
   0x5   : > { %s1301_s29 = sshll.u32 (!%p290_p2), %s1657_s28, 2  ;;  %s1303_s30 = sshll.u32 (!%p290_p2), %s1657_s28, 6 }
   0x6   : > { %293 = sbr.rel (%p290_p2) target bundleno = 707 (0x2c3), region = 52  ;;  %p332_p3 = scmp.lt.s32.totalorder (!%p290_p2), %s1301_s29, 7 }
   0x7   : > { %p342_p4 = scmp.lt.s32.totalorder (!%p290_p2), %s1303_s30, 127  ;;  %p1307_p5 = scmp.ne.s32.totalorder (!%p290_p2), %s1657_s28, 0 }
   0xd   : > { %s1814_s29 = smov (!%p332_p3, %s1301_s29), 7  ;;  %s1816_s30 = smov (!%p342_p4, %s1303_s30), 127 }
   0xe   : > { %s334_s11 = scalar_lea.vmem %s1804_s0, %s1814_s29  ;;  %s339_s14 = scalar_lea.vmem %s1805_s1, %s1814_s29  ;;  %v1602_v0 = vmov (!%p1307_p5), 0.0  }
   0xf   : > { %s1304_s15 = sshll.u32 %s1816_s30, 2  ;;  %357 = sbr.rel (%p1307_p5) target bundleno = 22 (0x16), region = 56  ;;  %358 = vst [vmem:[#allocation2] sm:$0x3] (!%p1307_p5), %v1602_v0 }
  0x10   : > { %s1676_s18 = scalar_lea.vmem %s1806_s2, %s1304_s15  ;;  %s1681_s21 = scalar_lea.vmem %s1807_s3, %s1304_s15 }
  0x16 PF: > { %v1518_v1 = vld [vmem:[%s1681_s21 + $0x40] sm:$0xff]   ;;  %v1522_v5 = vld [vmem:[%s1681_s21 + $0x48] sm:$0xff]   ;;  %v1526_v9 = vld [vmem:[%s1681_s21 + $0x50] sm:$0xff]   ;;  %v502_v31 = vlaneseq  ;;  %v1603_v35 = vmov 1966171168   ;;  %p1374_p6 = scmp.ne.s32.totalorder %s1657_s28, 1 }
  0x17   : > { %v1519_v2 = vld [vmem:[%s1681_s21 + $0xc0] sm:$0xff]   ;;  %1389 = vmatprep.subr.bf16.mxu0 %v1518_v1  ;;  %v1523_v6 = vld [vmem:[%s1681_s21 + $0xc8] sm:$0xff]   ;;  %v1527_v10 = vld [vmem:[%s1681_s21 + $0xd0] sm:$0xff]   ;;  %v500_v36 = vunpack.c.l.s4 %v1603_v35  ;;  %vm1605_vm0 = vmmov (!%p1374_p6), 0   ;;  %vm1233_vm1 = vcmask (!%p1374_p6), 1041408   ;;  %vm1237_vm2 = vcmask (!%p1374_p6), 1024  }
  0x18   : > { %v1520_v3 = vld [vmem:[%s1681_s21] sm:$0xff]   ;;  %1411 = vmatprep.subr.bf16.mxu1 %v1519_v2  ;;  %v1524_v7 = vld [vmem:[%s1681_s21 + $0x8] sm:$0xff]   ;;  %v1528_v11 = vld [vmem:[%s1681_s21 + $0x10] sm:$0xff]   ;;  %v503_v37 = vshrl.u32 %v502_v31, 7 }
  0x19   : > { %v1521_v4 = vld [vmem:[%s1681_s21 + $0x80] sm:$0xff]   ;;  %1390 = vmatpush3.bf16.msra.mxu0 %v1520_v3  ;;  %v1525_v8 = vld [vmem:[%s1681_s21 + $0x88] sm:$0xff]   ;;  %v1529_v12 = vld [vmem:[%s1681_s21 + $0x90] sm:$0xff]   ;;  %v501_v41 = vunpack.c.0.s8 %v500_v36 }
  0x1a   : > { %1412 = vmatpush3.bf16.msra.mxu1 %v1521_v4  ;;  %1391 = vmatprep.subr.bf16.mxu0 %v1522_v5  ;;  %v1530_v13 = vld [vmem:[%s1681_s21 + $0x58] sm:$0xff]   ;;  %v1534_v17 = vld [vmem:[%s1681_s21 + $0x60] sm:$0xff]   ;;  %v1538_v21 = vld [vmem:[%s1681_s21 + $0x68] sm:$0xff]  }
  0x1b   : > { %1413 = vmatprep.subr.bf16.mxu1 %v1523_v6  ;;  %v1531_v14 = vld [vmem:[%s1681_s21 + $0xd8] sm:$0xff]   ;;  %v1535_v18 = vld [vmem:[%s1681_s21 + $0xe0] sm:$0xff]   ;;  %v1539_v22 = vld [vmem:[%s1681_s21 + $0xe8] sm:$0xff]   ;;  %v1723_v42 = vsub.s32 %v501_v41, %v503_v37 }
  0x1c   : > { %v1532_v15 = vld [vmem:[%s1681_s21 + $0x18] sm:$0xff]   ;;  %v1536_v19 = vld [vmem:[%s1681_s21 + $0x20] sm:$0xff]   ;;  %v1540_v23 = vld [vmem:[%s1681_s21 + $0x28] sm:$0xff]  }
  0x1d   : > { %1392 = vmatpush3.bf16.msra.mxu0 %v1524_v7  ;;  %v1533_v16 = vld [vmem:[%s1681_s21 + $0x98] sm:$0xff]   ;;  %v1537_v20 = vld [vmem:[%s1681_s21 + $0xa0] sm:$0xff]   ;;  %v1541_v24 = vld [vmem:[%s1681_s21 + $0xa8] sm:$0xff]  }
  0x1e   : > { %1414 = vmatpush3.bf16.msra.mxu1 %v1525_v8  ;;  %1393 = vmatprep.subr.bf16.mxu0 %v1526_v9  ;;  %v1542_v25 = vld [vmem:[%s1681_s21 + $0x70] sm:$0xff]   ;;  %v1546_v29 = vld [vmem:[%s1681_s21 + $0x78] sm:$0xff]   ;;  %v1308_v34 = vld.sshfl [vmem:[%s339_s14] sm:$0x33 pattern:$0x75316420] }
  0x1f   : > { %1415 = vmatprep.subr.bf16.mxu1 %v1527_v10  ;;  %v1543_v26 = vld [vmem:[%s1681_s21 + $0xf0] sm:$0xff]   ;;  %v1547_v30 = vld [vmem:[%s1681_s21 + $0xf8] sm:$0xff]   ;;  %v1550_v38 = vld [vmem:[%s1676_s18 + $0x40] sm:$0xff]   ;;  %v498_v40 = vcombine.high %v1308_v34, %v1308_v34  ;;  %v505_v44 = vrot.slane %v1308_v34, %v1723_v42 }
  0x20   : > { %v1544_v27 = vld [vmem:[%s1681_s21 + $0x30] sm:$0xff]   ;;  %v1548_v32 = vld [vmem:[%s1681_s21 + $0x38] sm:$0xff]   ;;  %v1551_v39 = vld [vmem:[%s1676_s18 + $0xc0] sm:$0xff]  }
  0x21   : > { %1394 = vmatpush3.bf16.msra.mxu0 %v1528_v11  ;;  %v1545_v28 = vld [vmem:[%s1681_s21 + $0xb0] sm:$0xff]   ;;  %v1549_v33 = vld [vmem:[%s1681_s21 + $0xb8] sm:$0xff]   ;;  %v512_v43 = vrot.slane %v498_v40, %v1723_v42  ;;  %v1552_v45 = vld [vmem:[%s1676_s18] sm:$0xff]   ;;  %v513_v48 = vcombine.high %v505_v44, %v505_v44 }
  0x22   : > { %1416 = vmatpush3.bf16.msra.mxu1 %v1529_v12  ;;  %1395 = vmatprep.subr.bf16.mxu0 %v1530_v13  ;;  %v1554_v46 = vld [vmem:[%s1676_s18 + $0x48] sm:$0xff]   ;;  %v1553_v49 = vld [vmem:[%s1676_s18 + $0x80] sm:$0xff]   ;;  %v1558_v52 = vld [vmem:[%s1676_s18 + $0x50] sm:$0xff]  }
  0x23   : > { %1417 = vmatprep.subr.bf16.mxu1 %v1531_v14  ;;  %743 = vmatprep.mubr.bf16.mxu0 %v512_v43  ;;  %v514_v47 = vcombine.high %v512_v43, %v512_v43  ;;  %v1555_v50 = vld [vmem:[%s1676_s18 + $0xc8] sm:$0xff]   ;;  %v1559_v54 = vld [vmem:[%s1676_s18 + $0xd0] sm:$0xff]   ;;  %v1562_v56 = vld [vmem:[%s1676_s18 + $0x58] sm:$0xff]  }
  0x24   : > { %v1556_v51 = vld [vmem:[%s1676_s18 + $0x8] sm:$0xff]   ;;  %v1560_v55 = vld [vmem:[%s1676_s18 + $0x10] sm:$0xff]   ;;  %v1563_v58 = vld [vmem:[%s1676_s18 + $0xd8] sm:$0xff]  }
  0x25   : > { %1396 = vmatpush3.bf16.msra.mxu0 %v1532_v15  ;;  %783 = vmatprep.mubr.bf16.mxu1 %v514_v47  ;;  %v1557_v53 = vld [vmem:[%s1676_s18 + $0x88] sm:$0xff]   ;;  %v1561_v57 = vld [vmem:[%s1676_s18 + $0x90] sm:$0xff]   ;;  %v1564_v59 = vld [vmem:[%s1676_s18 + $0x18] sm:$0xff]  }
  0x26   : > { %1418 = vmatpush3.bf16.msra.mxu1 %v1533_v16  ;;  %1397 = vmatprep.subr.bf16.mxu0 %v1534_v17  ;;  %v1566_v60 = vld [vmem:[%s1676_s18 + $0x60] sm:$0xff]   ;;  %v1565_v61 = vld [vmem:[%s1676_s18 + $0x98] sm:$0xff]   ;;  %v1570_v0 = vld [vmem:[%s1676_s18 + $0x68] sm:$0xff]  }
  0x27   : > { %1419 = vmatprep.subr.bf16.mxu1 %v1535_v18  ;;  %v1567_v62 = vld [vmem:[%s1676_s18 + $0xe0] sm:$0xff]   ;;  %v1571_v2 = vld [vmem:[%s1676_s18 + $0xe8] sm:$0xff]   ;;  %v1574_v4 = vld [vmem:[%s1676_s18 + $0x70] sm:$0xff]  }
  0x28   : > { %v1568_v63 = vld [vmem:[%s1676_s18 + $0x20] sm:$0xff]   ;;  %v1572_v3 = vld [vmem:[%s1676_s18 + $0x28] sm:$0xff]   ;;  %v1575_v6 = vld [vmem:[%s1676_s18 + $0xf0] sm:$0xff]  }
  0x29   : > { %1398 = vmatpush3.bf16.msra.mxu0 %v1536_v19  ;;  %v1569_v1 = vld [vmem:[%s1676_s18 + $0xa0] sm:$0xff]   ;;  %v1573_v5 = vld [vmem:[%s1676_s18 + $0xa8] sm:$0xff]   ;;  %v1576_v7 = vld [vmem:[%s1676_s18 + $0x30] sm:$0xff]  }
  0x2a   : > { %1420 = vmatpush3.bf16.msra.mxu1 %v1537_v20  ;;  %1399 = vmatprep.subr.bf16.mxu0 %v1538_v21  ;;  %v1578_v8 = vld [vmem:[%s1676_s18 + $0x78] sm:$0xff]   ;;  %v1577_v9 = vld [vmem:[%s1676_s18 + $0xb0] sm:$0xff]   ;;  %v1341_v10 = vld.sshfl [vmem:[%s334_s11] sm:$0x33 pattern:$0x75316420] }
  0x2b   : > { %1421 = vmatprep.subr.bf16.mxu1 %v1539_v22  ;;  %v1579_v11 = vld [vmem:[%s1676_s18 + $0xf8] sm:$0xff]   ;;  %v799_v12 = vcombine.high %v1341_v10, %v1341_v10  ;;  %v806_v15 = vrot.slane %v1341_v10, %v1723_v42  ;;  %v359_v40 = vld [vmem:[#allocation2] sm:$0x3]  ;;  %v1584_v47 = vld [vmem:[%s1809_s5 + $0x10] sm:$0xff] (!%p1374_p6)  }
  0x2c   : > { %v1580_v13 = vld [vmem:[%s1676_s18 + $0x38] sm:$0xff]  }
  0x2d   : > { %1400 = vmatpush3.bf16.msra.mxu0 %v1540_v23  ;;  %v813_v14 = vrot.slane %v799_v12, %v1723_v42  ;;  %v1581_v16 = vld [vmem:[%s1676_s18 + $0xb8] sm:$0xff]   ;;  %v814_v18 = vcombine.high %v806_v15, %v806_v15 }
  0x2e   : > { %1422 = vmatpush3.bf16.msra.mxu1 %v1541_v24  ;;  %1401 = vmatprep.subr.bf16.mxu0 %v1542_v25 }
  0x2f   : > { %1423 = vmatprep.subr.bf16.mxu1 %v1543_v26  ;;  %v815_v17 = vcombine.high %v813_v14, %v813_v14 }
  0x31   : > { %1402 = vmatpush3.bf16.msra.mxu0 %v1544_v27 }
  0x32   : > { %1424 = vmatpush3.bf16.msra.mxu1 %v1545_v28  ;;  %1403 = vmatprep.subr.bf16.mxu0 %v1546_v29 }
  0x33   : > { %1425 = vmatprep.subr.bf16.mxu1 %v1547_v30 }
  0x35   : > { %1404 = vmatpush3.bf16.msra.mxu0 %v1548_v32 }
  0x36   : > { %1426 = vmatpush3.bf16.msra.mxu1 %v1549_v33  ;;  %1433 = vmatprep.subr.bf16.mxu0 %v1550_v38 }
  0x37   : > { %1455 = vmatprep.subr.bf16.mxu1 %v1551_v39 }
  0x38   : > { %744 = vmatmul.mubr.bf16.vlgmr.msra.gmra.mrb[0].mxu0 %v505_v44  ;;  %v1582_v44 = vld [vmem:[%s1809_s5] sm:$0xff] (!%p1374_p6)  }
  0x39   : > { %1434 = vmatpush3.bf16.msra.mxu0 %v1552_v45  ;;  %784 = vmatmul.mubr.bf16.vlgmr.msra.gmra.mrb[0].mxu1 %v513_v48  ;;  %v1604_v45 = vmov (!%p1374_p6), 0.0   ;;  %v1585_v48 = vld [vmem:[%s1809_s5 + $0x18] sm:$0xff] (!%p1374_p6)  }
  0x3a   : > { %1435 = vmatprep.subr.bf16.mxu0 %v1554_v46  ;;  %1456 = vmatpush3.bf16.msra.mxu1 %v1553_v49  ;;  %v1583_v46 = vld [vmem:[%s1809_s5 + $0x8] sm:$0xff] (!%p1374_p6)   ;;  %v1586_v49 = vld [vmem:[%s1809_s5 + $0x20] sm:$0xff] (!%p1374_p6)  }
  0x3b   : > { %1457 = vmatprep.subr.bf16.mxu1 %v1555_v50  ;;  %1044 = vmatprep.mubr.bf16.mxu0 %v813_v14  ;;  %v1587_v50 = vld [vmem:[%s1809_s5 + $0x28] sm:$0xff] (!%p1374_p6)  }
  0x3c   : > { %1084 = vmatprep.mubr.bf16.mxu1 %v815_v17 }
  0x3d   : > { %1436 = vmatpush3.bf16.msra.mxu0 %v1556_v51  ;;  %v1588_v51 = vld [vmem:[%s1809_s5 + $0x30] sm:$0xff] (!%p1374_p6)  }
  0x3e   : > { %1437 = vmatprep.subr.bf16.mxu0 %v1558_v52  ;;  %1458 = vmatpush3.bf16.msra.mxu1 %v1557_v53  ;;  %v1375_v53 = vld [vmem:[%s1808_s4] ss:$0 sm:$0xff] (!%p1374_p6) }
  0x3f   : > { %1459 = vmatprep.subr.bf16.mxu1 %v1559_v54 }
  0x41   : > { %1438 = vmatpush3.bf16.msra.mxu0 %v1560_v55  ;;  %v1589_v55 = vld [vmem:[%s1809_s5 + $0x38] sm:$0xff] (!%p1374_p6)  }
  0x42   : > { %1439 = vmatprep.subr.bf16.mxu0 %v1562_v56  ;;  %1460 = vmatpush3.bf16.msra.mxu1 %v1561_v57  ;;  %v1376_v57 = vld [vmem:[%s1810_s6] ss:$0 sm:$0xff] (!%p1374_p6) }
  0x43   : > { %1461 = vmatprep.subr.bf16.mxu1 %v1563_v58 }
  0x45   : > { %1440 = vmatpush3.bf16.msra.mxu0 %v1564_v59 }
  0x46   : > { %1441 = vmatprep.subr.bf16.mxu0 %v1566_v60  ;;  %1462 = vmatpush3.bf16.msra.mxu1 %v1565_v61 }
  0x47   : > { %1463 = vmatprep.subr.bf16.mxu1 %v1567_v62 }
  0x49   : > { %1442 = vmatpush3.bf16.msra.mxu0 %v1568_v63 }
  0x4a   : > { %1443 = vmatprep.subr.bf16.mxu0 %v1570_v0  ;;  %1464 = vmatpush3.bf16.msra.mxu1 %v1569_v1 }
  0x4b   : > { %1465 = vmatprep.subr.bf16.mxu1 %v1571_v2  ;;  %v1386_v2 = vld [vmem:[%s1811_s7] ss:$0 sm:$0xff] (!%p1374_p6) }
  0x4d   : > { %1444 = vmatpush3.bf16.msra.mxu0 %v1572_v3 }
  0x4e   : > { %1445 = vmatprep.subr.bf16.mxu0 %v1574_v4  ;;  %1466 = vmatpush3.bf16.msra.mxu1 %v1573_v5 }
  0x4f   : > { %1467 = vmatprep.subr.bf16.mxu1 %v1575_v6 }
  0x51   : > { %1446 = vmatpush3.bf16.msra.mxu0 %v1576_v7 }
  0x52   : > { %1447 = vmatprep.subr.bf16.mxu0 %v1578_v8  ;;  %1468 = vmatpush3.bf16.msra.mxu1 %v1577_v9 }
  0x53   : > { %1469 = vmatprep.subr.bf16.mxu1 %v1579_v11 }
  0x55   : > { %1448 = vmatpush3.bf16.msra.mxu0 %v1580_v13 }
  0x56   : > { %1470 = vmatpush3.bf16.msra.mxu1 %v1581_v16  ;;  %1486 = vmatprep.subr.bf16.mxu0 (!%p1374_p6), %v1604_v45 }
  0x58   : > { %1045 = vmatmul.mubr.bf16.vlgmr.msra.gmra.mrb[4].mxu0 %v806_v15 }
  0x59   : > { %1085 = vmatmul.mubr.bf16.vlgmr.msra.gmra.mrb[4].mxu1 %v814_v18  ;;  %1487 = vmatpush3.bf16.msra.mxu0 (!%p1374_p6), %v1582_v44 }
  0x5a   : > { %1502 = vmatprep.mubr.msk.bf16.mxu0 (!%p1374_p6), %vm1605_vm0, %v1604_v45  ;;  %1488 = vmatprep.subr.bf16.mxu0 (!%p1374_p6), %v1604_v45 }
  0x5d   : > { %1489 = vmatpush3.bf16.msra.mxu0 (!%p1374_p6), %v1583_v46 }
  0x5e   : > { %1490 = vmatprep.subr.bf16.mxu0 (!%p1374_p6), %v1604_v45 }
  0x61   : > { %1491 = vmatpush3.bf16.msra.mxu0 (!%p1374_p6), %v1584_v47 }
  0x62   : > { %1492 = vmatprep.subr.bf16.mxu0 (!%p1374_p6), %v1604_v45 }
  0x65   : > { %1493 = vmatpush3.bf16.msra.mxu0 (!%p1374_p6), %v1585_v48 }
  0x66   : > { %1494 = vmatprep.subr.bf16.mxu0 (!%p1374_p6), %v1604_v45 }
  0x69   : > { %1495 = vmatpush3.bf16.msra.mxu0 (!%p1374_p6), %v1586_v49 }
  0x6a   : > { %1496 = vmatprep.subr.bf16.mxu0 (!%p1374_p6), %v1604_v45 }
  0x6d   : > { %1497 = vmatpush3.bf16.msra.mxu0 (!%p1374_p6), %v1587_v50 }
  0x6e   : > { %1498 = vmatprep.subr.bf16.mxu0 (!%p1374_p6), %v1604_v45 }
  0x71   : > { %1499 = vmatpush3.bf16.msra.mxu0 (!%p1374_p6), %v1588_v51 }
  0x72   : > { %1500 = vmatprep.subr.bf16.mxu0 (!%p1374_p6), %v1604_v45 }
  0x75   : > { %1501 = vmatpush3.bf16.msra.mxu0 (!%p1374_p6), %v1589_v55 }
 0x10b   : > { %v1405_v19 = vpop.f32.mrb[0].mxu0 }
 0x10c   : > { %v1406_v20 = vpop.f32.mrb[1].mxu0  ;;  %v1427_v21 = vpop.f32.mrb[0].mxu1 }
 0x10d   : > { %v1407_v22 = vadd.f32 %v1406_v20, %v1405_v19  ;;  %v1408_v23 = vpop.f32.mrb[2].mxu0  ;;  %v1428_v24 = vpop.f32.mrb[1].mxu1 }
 0x10e   : > { %v1409_v25 = vpop.f32.mrb[3].mxu0  ;;  %v1429_v26 = vadd.f32 %v1428_v24, %v1427_v21  ;;  %v1430_v27 = vpop.f32.mrb[2].mxu1 }
 0x10f   : > { %v1431_v28 = vpop.f32.mrb[3].mxu1 }
 0x110   : > { %v786_v29 = vadd.f32 %v1429_v26, %v1407_v22 }
 0x12b   : > { %v1449_v30 = vpop.f32.mrb[4].mxu0 }
 0x12c   : > { %v1450_v31 = vpop.f32.mrb[5].mxu0  ;;  %v1471_v32 = vpop.f32.mrb[4].mxu1 }
 0x12d   : > { %v1451_v33 = vadd.f32 %v1450_v31, %v1449_v30  ;;  %v1452_v34 = vpop.f32.mrb[6].mxu0  ;;  %v1472_v35 = vpop.f32.mrb[5].mxu1 }
 0x12e   : > { %v1453_v36 = vpop.f32.mrb[7].mxu0  ;;  %v1473_v38 = vadd.f32 %v1472_v35, %v1471_v32  ;;  %v1474_v39 = vpop.f32.mrb[6].mxu1 }
 0x12f   : > { %v1047_v37 = vadd.f32 %v1451_v33, %v786_v29  ;;  %v1475_v41 = vpop.f32.mrb[7].mxu1  ;;  %1097 = sbr.rel (%p1374_p6) target bundleno = 707 (0x2c3), region = 60 }
 0x131   : > { %v1087_v42 = vadd.f32 %v1473_v38, %v1047_v37 }
 0x133   : > { %v1092_v43 = vadd.f32 %v1087_v42, %v359_v40 }
 0x135   : > { %1093 = vst [vmem:[#allocation2] sm:$0x3] %v1092_v43 }
 0x13c   : > { %v1098_v52 = vld [vmem:[#allocation2] sm:$0x3] }
 0x13d   : > { %v1106_v54 = vadd.f32 %v1375_v53, %v1098_v52 }
 0x13f   : > { %v1107_v56 = vpack.c.bf16 %v1106_v54, %v1106_v54 }
 0x141   : > { %1503 = vmatmul.mubr.bf16.vlgmr.msra.gmra.mrb[0].mxu0 %v1107_v56 }
 0x214   : > { %v1213_v58 = vpop.f32.mrb[0].mxu0 }
 0x215   : > { %v1214_v59 = vadd.f32 %v1376_v57, %v1213_v58  ;;  %v1504_v60 = vpop.f32.mrb[1].mxu0 }
 0x216   : > { %v1216_v61 = vpop.f32.mrb[2].mxu0 }
 0x217   : > { %v1385_v62 = vmul.f32 -1.442695, %v1214_v59  ;;  %v1505_v63 = vpop.f32.mrb[3].mxu0 }
 0x219   : > { %1590 = vpow2.f32 %v1385_v62 }
 0x223   : > { %v1591_v0 = vpop.eup %1590 }
 0x224   : > { %v1222_v1 = vadd.f32 1.0, %v1591_v0 }
 0x226   : > { %1592 = vrcp.f32 %v1222_v1 }
 0x230   : > { %v1593_v3 = vpop.eup %1592 }
 0x231   : > { %v1232_v4 = vmul.f32 %v1593_v3, %v1386_v2 }
 0x233   : > { %v1234_v5 = vsel %vm1233_vm1, %v1232_v4, 0.0 }
 0x234   : > { %1235 = vadd.xlane.f32.xlu0 %v1234_v5 }
 0x2c1   : > { %v1236_v6 = vpop.xlane.xlu0 %1235 }
 0x2c2   : > { %1238 = vst.msk [vmem:[%s1812_s8] sm:$0x3] %vm1237_vm2, %v1236_v6 }
 0x2c3 PF: > { %s18_s27 = sadd.s32 1, %s1600_s27  }
 0x2c4   : > { %p15_p7 = scmp.ge.s32.totalorder %s18_s27, 4  }
 0x2c6   :  { %17 = sbr.rel (!%p15_p7) target bundleno = 1 (0x1), region = 95 }

</bundles_post_ra>
